<compile_context>
chip_gen: v5e
topology: v5e:2x2
jax: 0.10.0
libtpu: 0.0.40
codegen_flags: <defaults>
</compile_context>

<pallas_src>
import functools

import jax
import jax.numpy as jnp
from jax.experimental import pallas as pl
from jax.experimental.pallas import tpu as pltpu


def _dice_kernel(logits_ref, labels_ref, inter_ref, card_ref, *,
                 hw, s_tile, ragged):
    i = pl.program_id(1)
    C = logits_ref.shape[0]

    @pl.when(i == 0)
    def _():
        inter_ref[...] = jnp.zeros_like(inter_ref)
        card_ref[...] = jnp.zeros_like(card_ref)

    # Per-class (S, 128) slabs: softmax over the class axis is elementwise
    # across C lane-dense slabs (pure VPU/EUP, no XLU in the hot path).
    # Max / subtract stay in the input dtype (bf16 stays bf16); upcast at exp.
    xs = [logits_ref[c] for c in range(C)]
    m = xs[0]
    for c in range(1, C):
        m = jnp.maximum(m, xs[c])
    es = [jnp.exp((xs[c] - m).astype(jnp.float32)) for c in range(C)]
    s = es[0]
    for c in range(1, C):
        s = s + es[c]
    inv = pl.reciprocal(s)      # exact: 1 reciprocal + C muls, not C divides

    lab = labels_ref[0].astype(jnp.int32)        # (S, 128); shipped as int8

    def accumulate(valid):
        inter_parts = []
        card_parts = []
        for c in range(C):
            p = es[c] * inv                               # (S, 128)
            oh = (lab == c).astype(jnp.float32)           # (S, 128)
            if valid is not None:
                p = jnp.where(valid, p, 0.0)
                oh = jnp.where(valid, oh, 0.0)
            # Per-step sublane reduce: the accumulator update is one (1, 128)
            # row per class instead of a full-tile read-modify-write.
            inter_parts.append(jnp.sum(p * oh, axis=0, keepdims=True))
            card_parts.append(jnp.sum(p + oh, axis=0, keepdims=True))
        inter_ref[...] += jnp.concatenate(inter_parts, axis=0)   # (C, 128)
        card_ref[...] += jnp.concatenate(card_parts, axis=0)

    if not ragged:
        accumulate(None)
    else:
        last = pl.num_programs(1) - 1

        @pl.when(i != last)
        def _():
            accumulate(None)

        @pl.when(i == last)
        def _():
            # Mask columns past the true H*W: covers both the <128-lane pad
            # appended in the wrapper and the out-of-bounds sublanes of a
            # partial final block (whose contents are undefined).
            row = jax.lax.broadcasted_iota(jnp.int32, (s_tile, 128), 0)
            lane = jax.lax.broadcasted_iota(jnp.int32, (s_tile, 128), 1)
            pos = (i * s_tile + row) * 128 + lane
            accumulate(pos < hw)


def _pick_s_tile(s_total, target):
    """Sublane tile: big (amortize per-step overhead), multiple of 32 (int8
    label tiling), preferably a divisor of s_total (no masked tail tile)."""
    if s_total <= target:
        return s_total                       # block == full dim: always legal
    for cand in range(target, 31, -32):      # prefer a divisor -> no ragged tile
        if s_total % cand == 0:
            return cand
    return target                            # ragged: mask the last tile


def dice_loss(logits_nchw, true_n1hw, *, num_classes=3, smooth=0.0, eps=1e-7,
              tile_target=512):
    N, C, H, W = logits_nchw.shape
    assert C == num_classes
    HW = H * W

    S_total = -(-HW // 128)
    HW_128 = S_total * 128

    # Free, contiguous reshapes (no transpose).  Labels travel as int8.
    logits_r = logits_nchw.reshape(N, C, HW)
    labels_r = true_n1hw.reshape(N, 1, HW).astype(jnp.int8)
    if HW_128 != HW:
        pad = HW_128 - HW
        logits_r = jnp.pad(logits_r, ((0, 0), (0, 0), (0, pad)))
        labels_r = jnp.pad(labels_r, ((0, 0), (0, 0), (0, pad)),
                           constant_values=-1)   # -1 never matches a class
    logits_r = logits_r.reshape(N, C, S_total, 128)
    labels_r = labels_r.reshape(N, 1, S_total, 128)

    S_tile = _pick_s_tile(S_total, tile_target)
    num_tiles = -(-S_total // S_tile)
    ragged = (HW_128 != HW) or (S_total % S_tile != 0)

    kernel = functools.partial(_dice_kernel, hw=HW, s_tile=S_tile,
                               ragged=ragged)

    cost = pl.CostEstimate(
        flops=int(8 * N * C * HW),
        transcendentals=int(N * HW * (C + 1)),
        bytes_accessed=int(logits_r.size * logits_r.dtype.itemsize
                           + labels_r.size                     # int8 labels
                           + 2 * N * C * 128 * 4),
    )

    inter_nc, card_nc = pl.pallas_call(
        kernel,
        out_shape=(jax.ShapeDtypeStruct((N, C, 128), jnp.float32),
                   jax.ShapeDtypeStruct((N, C, 128), jnp.float32)),
        grid_spec=pltpu.PrefetchScalarGridSpec(
            num_scalar_prefetch=0,
            grid=(N, num_tiles),
            in_specs=[
                pl.BlockSpec((None, C, S_tile, 128),
                             lambda n, i: (n, 0, i, 0)),
                pl.BlockSpec((None, 1, S_tile, 128),
                             lambda n, i: (n, 0, i, 0)),
            ],
            out_specs=[
                pl.BlockSpec((None, C, 128), lambda n, i: (n, 0, 0)),
                pl.BlockSpec((None, C, 128), lambda n, i: (n, 0, 0)),
            ],
        ),
        compiler_params=pltpu.CompilerParams(
            dimension_semantics=("parallel", "arbitrary")),
        cost_estimate=cost,
    )(logits_r, labels_r)

    # Tiny finalize in XLA: reduce batch + lanes, then the dice formula.
    intersection = jnp.sum(inter_nc, axis=(0, 2))          # (C,)
    cardinality = jnp.sum(card_nc, axis=(0, 2))            # (C,)
    dice = (2.0 * intersection + smooth) / (cardinality + eps + smooth)
    return 1.0 - jnp.mean(dice)


def _reference_dice_loss(logits, true, num_classes=3, smooth=0.0, eps=1e-7):
    # Plain-JAX replica of the PyTorch forward, for verification.
    true_1_hot = jax.nn.one_hot(true[:, 0], num_classes, dtype=jnp.float32)
    true_1_hot = jnp.transpose(true_1_hot, (0, 3, 1, 2))
    probas = jax.nn.softmax(logits.astype(jnp.float32), axis=1)
    dims = (0, 2, 3)
    intersection = jnp.sum(probas * true_1_hot, axis=dims)
    cardinality = jnp.sum(probas + true_1_hot, axis=dims)
    dice = ((2.0 * intersection + smooth) / (cardinality + eps + smooth)).mean()
    return 1.0 - dice


if __name__ == "__main__":
    num_classes = 3
    key = jax.random.PRNGKey(0)
    k1, k2, k3, k4, k5, k6 = jax.random.split(key, 6)

    def check(logits, true, **kw):
        loss = jax.block_until_ready(
            dice_loss(logits, true, num_classes=num_classes, **kw))
        ref = jax.block_until_ready(
            _reference_dice_loss(logits, true, num_classes))
        assert jnp.allclose(loss, ref, atol=1e-5, rtol=1e-5), (loss, ref)

    # Case 1: HW a multiple of 128 (single full tile, no masking path).
    logits1 = jax.random.normal(k1, (2, num_classes, 16, 16), dtype=jnp.float32)
    true1 = jax.random.randint(k2, (2, 1, 16, 16), 0, num_classes, jnp.int32)
    check(logits1, true1)

    # Case 2: HW < 128 and not a multiple of 128 (lane pad + masked tile).
    logits2 = jax.random.normal(k3, (2, num_classes, 5, 7), dtype=jnp.float32)
    true2 = jax.random.randint(k4, (2, 1, 5, 7), 0, num_classes, jnp.int32)
    check(logits2, true2)

    # Case 3: multi-tile grid with a partial (masked) last block — exercises
    # both pl.when accumulate branches at runtime (small tile for testing).
    logits3 = jax.random.normal(k5, (1, num_classes, 80, 80), dtype=jnp.float32)
    true3 = jax.random.randint(k6, (1, 1, 80, 80), 0, num_classes, jnp.int32)
    check(logits3, true3, tile_target=32)

    print("KERNEL_OK")
</pallas_src>

<mosaic_0001>
module attributes {stable_mosaic.version = 11 : i64} {
  func.func @_dice_kernel(%arg0: i32, %arg1: i32, %arg2: memref<1x3x2x128xf32, #tpu.memory_space<vmem>>, %arg3: memref<1x1x2x128xi8, #tpu.memory_space<vmem>>, %arg4: memref<1x3x128xf32, #tpu.memory_space<vmem>>, %arg5: memref<1x3x128xf32, #tpu.memory_space<vmem>>) attributes {dimension_semantics = [#tpu.dimension_semantics<parallel>, #tpu.dimension_semantics<arbitrary>], iteration_bounds = array<i64: 2, 1>, scalar_prefetch = 0 : i64, scratch_operands = 0 : i64, tpu.core_type = #tpu.core_type<tc>, window_params = [{transform_indices = @transform_0, window_bounds = array<i64: 1, 3, 2, 128>}, {transform_indices = @transform_1, window_bounds = array<i64: 1, 1, 2, 128>}, {transform_indices = @transform_2, window_bounds = array<i64: 1, 3, 128>}, {transform_indices = @transform_3, window_bounds = array<i64: 1, 3, 128>}]} {
    %c0_i32 = arith.constant 0 : i32
    %0 = arith.cmpi eq, %arg1, %c0_i32 : i32
    %1 = arith.extui %0 : i1 to i32
    %c0_i32_0 = arith.constant 0 : i32
    %2 = arith.cmpi ne, %1, %c0_i32_0 : i32
    scf.if %2 {
      %cst_32 = arith.constant 0.000000e+00 : f32
      %70 = vector.broadcast %cst_32 : f32 to vector<3x128xf32>
      %c0_33 = arith.constant 0 : index
      %c0_34 = arith.constant 0 : index
      %c0_35 = arith.constant 0 : index
      %71 = vector.load %arg4[%c0_33, %c0_34, %c0_35] : memref<1x3x128xf32, #tpu.memory_space<vmem>>, vector<1x3x128xf32>
      %72 = vector.shape_cast %71 : vector<1x3x128xf32> to vector<3x128xf32>
      %73 = vector.shape_cast %70 : vector<3x128xf32> to vector<1x3x128xf32>
      tpu.vector_store %arg4[%c0_33, %c0_34, %c0_35], %73 {strides = array<i32>} : memref<1x3x128xf32, #tpu.memory_space<vmem>>, vector<1x3x128xf32>,
      %cst_36 = arith.constant 0.000000e+00 : f32
      %74 = vector.broadcast %cst_36 : f32 to vector<3x128xf32>
      %c0_37 = arith.constant 0 : index
      %c0_38 = arith.constant 0 : index
      %c0_39 = arith.constant 0 : index
      %75 = vector.load %arg5[%c0_37, %c0_38, %c0_39] : memref<1x3x128xf32, #tpu.memory_space<vmem>>, vector<1x3x128xf32>
      %76 = vector.shape_cast %75 : vector<1x3x128xf32> to vector<3x128xf32>
      %77 = vector.shape_cast %74 : vector<3x128xf32> to vector<1x3x128xf32>
      tpu.vector_store %arg5[%c0_37, %c0_38, %c0_39], %77 {strides = array<i32>} : memref<1x3x128xf32, #tpu.memory_space<vmem>>, vector<1x3x128xf32>,
    } else {
    }
    %c0 = arith.constant 0 : index
    %c0_1 = arith.constant 0 : index
    %c0_2 = arith.constant 0 : index
    %c0_3 = arith.constant 0 : index
    %3 = vector.load %arg2[%c0, %c0_1, %c0_2, %c0_3] : memref<1x3x2x128xf32, #tpu.memory_space<vmem>>, vector<1x1x2x128xf32>
    %4 = vector.shape_cast %3 : vector<1x1x2x128xf32> to vector<2x128xf32>
    %c0_4 = arith.constant 0 : index
    %c1 = arith.constant 1 : index
    %c0_5 = arith.constant 0 : index
    %c0_6 = arith.constant 0 : index
    %5 = vector.load %arg2[%c0_4, %c1, %c0_5, %c0_6] : memref<1x3x2x128xf32, #tpu.memory_space<vmem>>, vector<1x1x2x128xf32>
    %6 = vector.shape_cast %5 : vector<1x1x2x128xf32> to vector<2x128xf32>
    %c0_7 = arith.constant 0 : index
    %c2 = arith.constant 2 : index
    %c0_8 = arith.constant 0 : index
    %c0_9 = arith.constant 0 : index
    %7 = vector.load %arg2[%c0_7, %c2, %c0_8, %c0_9] : memref<1x3x2x128xf32, #tpu.memory_space<vmem>>, vector<1x1x2x128xf32>
    %8 = vector.shape_cast %7 : vector<1x1x2x128xf32> to vector<2x128xf32>
    %9 = arith.maximumf %4, %6 : vector<2x128xf32>
    %10 = arith.maximumf %9, %8 : vector<2x128xf32>
    %11 = arith.subf %4, %10 : vector<2x128xf32>
    %12 = math.exp %11 : vector<2x128xf32>
    %13 = arith.subf %6, %10 : vector<2x128xf32>
    %14 = math.exp %13 : vector<2x128xf32>
    %15 = arith.subf %8, %10 : vector<2x128xf32>
    %16 = math.exp %15 : vector<2x128xf32>
    %17 = arith.addf %12, %14 : vector<2x128xf32>
    %18 = arith.addf %17, %16 : vector<2x128xf32>
    %19 = tpu.reciprocal %18 : vector<2x128xf32> -> vector<2x128xf32>
    %c0_10 = arith.constant 0 : index
    %c0_11 = arith.constant 0 : index
    %c0_12 = arith.constant 0 : index
    %c0_13 = arith.constant 0 : index
    %20 = vector.load %arg3[%c0_10, %c0_11, %c0_12, %c0_13] : memref<1x1x2x128xi8, #tpu.memory_space<vmem>>, vector<1x1x2x128xi8>
    %21 = vector.shape_cast %20 : vector<1x1x2x128xi8> to vector<2x128xi8>
    %22 = arith.extsi %21 : vector<2x128xi8> to vector<2x128xi32>
    %23 = arith.mulf %12, %19 : vector<2x128xf32>
    %c0_i32_14 = arith.constant 0 : i32
    %24 = vector.broadcast %c0_i32_14 : i32 to vector<2x128xi32>
    %25 = arith.cmpi eq, %22, %24 : vector<2x128xi32>
    %26 = arith.extui %25 : vector<2x128xi1> to vector<2x128xi32>
    %27 = arith.sitofp %26 : vector<2x128xi32> to vector<2x128xf32>
    %28 = arith.mulf %23, %27 : vector<2x128xf32>
    %cst = arith.constant dense<0.000000e+00> : vector<128xf32>
    %29 = vector.multi_reduction <add>, %28, %cst [0] : vector<2x128xf32> to vector<128xf32>
    %30 = vector.shape_cast %29 : vector<128xf32> to vector<1x128xf32>
    %31 = arith.addf %23, %27 : vector<2x128xf32>
    %cst_15 = arith.constant dense<0.000000e+00> : vector<128xf32>
    %32 = vector.multi_reduction <add>, %31, %cst_15 [0] : vector<2x128xf32> to vector<128xf32>
    %33 = vector.shape_cast %32 : vector<128xf32> to vector<1x128xf32>
    %34 = arith.mulf %14, %19 : vector<2x128xf32>
    %c1_i32 = arith.constant 1 : i32
    %35 = vector.broadcast %c1_i32 : i32 to vector<2x128xi32>
    %36 = arith.cmpi eq, %22, %35 : vector<2x128xi32>
    %37 = arith.extui %36 : vector<2x128xi1> to vector<2x128xi32>
    %38 = arith.sitofp %37 : vector<2x128xi32> to vector<2x128xf32>
    %39 = arith.mulf %34, %38 : vector<2x128xf32>
    %cst_16 = arith.constant dense<0.000000e+00> : vector<128xf32>
    %40 = vector.multi_reduction <add>, %39, %cst_16 [0] : vector<2x128xf32> to vector<128xf32>
    %41 = vector.shape_cast %40 : vector<128xf32> to vector<1x128xf32>
    %42 = arith.addf %34, %38 : vector<2x128xf32>
    %cst_17 = arith.constant dense<0.000000e+00> : vector<128xf32>
    %43 = vector.multi_reduction <add>, %42, %cst_17 [0] : vector<2x128xf32> to vector<128xf32>
    %44 = vector.shape_cast %43 : vector<128xf32> to vector<1x128xf32>
    %45 = arith.mulf %16, %19 : vector<2x128xf32>
    %c2_i32 = arith.constant 2 : i32
    %46 = vector.broadcast %c2_i32 : i32 to vector<2x128xi32>
    %47 = arith.cmpi eq, %22, %46 : vector<2x128xi32>
    %48 = arith.extui %47 : vector<2x128xi1> to vector<2x128xi32>
    %49 = arith.sitofp %48 : vector<2x128xi32> to vector<2x128xf32>
    %50 = arith.mulf %45, %49 : vector<2x128xf32>
    %cst_18 = arith.constant dense<0.000000e+00> : vector<128xf32>
    %51 = vector.multi_reduction <add>, %50, %cst_18 [0] : vector<2x128xf32> to vector<128xf32>
    %52 = vector.shape_cast %51 : vector<128xf32> to vector<1x128xf32>
    %53 = arith.addf %45, %49 : vector<2x128xf32>
    %cst_19 = arith.constant dense<0.000000e+00> : vector<128xf32>
    %54 = vector.multi_reduction <add>, %53, %cst_19 [0] : vector<2x128xf32> to vector<128xf32>
    %55 = vector.shape_cast %54 : vector<128xf32> to vector<1x128xf32>
    %c0_20 = arith.constant 0 : index
    %c0_21 = arith.constant 0 : index
    %c0_22 = arith.constant 0 : index
    %56 = vector.load %arg4[%c0_20, %c0_21, %c0_22] : memref<1x3x128xf32, #tpu.memory_space<vmem>>, vector<1x3x128xf32>
    %57 = vector.shape_cast %56 : vector<1x3x128xf32> to vector<3x128xf32>
    %58 = tpu.concatenate %30, %41, %52 in 0 : vector<1x128xf32>, vector<1x128xf32>, vector<1x128xf32> -> vector<3x128xf32>
    %59 = arith.addf %57, %58 : vector<3x128xf32>
    %c0_23 = arith.constant 0 : index
    %c0_24 = arith.constant 0 : index
    %c0_25 = arith.constant 0 : index
    %60 = vector.load %arg4[%c0_23, %c0_24, %c0_25] : memref<1x3x128xf32, #tpu.memory_space<vmem>>, vector<1x3x128xf32>
    %61 = vector.shape_cast %60 : vector<1x3x128xf32> to vector<3x128xf32>
    %62 = vector.shape_cast %59 : vector<3x128xf32> to vector<1x3x128xf32>
    tpu.vector_store %arg4[%c0_23, %c0_24, %c0_25], %62 {strides = array<i32>} : memref<1x3x128xf32, #tpu.memory_space<vmem>>, vector<1x3x128xf32>,
    %c0_26 = arith.constant 0 : index
    %c0_27 = arith.constant 0 : index
    %c0_28 = arith.constant 0 : index
    %63 = vector.load %arg5[%c0_26, %c0_27, %c0_28] : memref<1x3x128xf32, #tpu.memory_space<vmem>>, vector<1x3x128xf32>
    %64 = vector.shape_cast %63 : vector<1x3x128xf32> to vector<3x128xf32>
    %65 = tpu.concatenate %33, %44, %55 in 0 : vector<1x128xf32>, vector<1x128xf32>, vector<1x128xf32> -> vector<3x128xf32>
    %66 = arith.addf %64, %65 : vector<3x128xf32>
    %c0_29 = arith.constant 0 : index
    %c0_30 = arith.constant 0 : index
    %c0_31 = arith.constant 0 : index
    %67 = vector.load %arg5[%c0_29, %c0_30, %c0_31] : memref<1x3x128xf32, #tpu.memory_space<vmem>>, vector<1x3x128xf32>
    %68 = vector.shape_cast %67 : vector<1x3x128xf32> to vector<3x128xf32>
    %69 = vector.shape_cast %66 : vector<3x128xf32> to vector<1x3x128xf32>
    tpu.vector_store %arg5[%c0_29, %c0_30, %c0_31], %69 {strides = array<i32>} : memref<1x3x128xf32, #tpu.memory_space<vmem>>, vector<1x3x128xf32>,
    return
  }
  func.func @transform_0(%arg0: i32, %arg1: i32) -> (i32, i32, i32, i32) {
    %c0_i32 = arith.constant 0 : i32
    %c0_i32_0 = arith.constant 0 : i32
    %c0_i32_1 = arith.constant 0 : i32
    return %arg0, %c0_i32, %arg1, %c0_i32_0 : i32, i32, i32, i32
  }
  func.func @transform_1(%arg0: i32, %arg1: i32) -> (i32, i32, i32, i32) {
    %c0_i32 = arith.constant 0 : i32
    %c0_i32_0 = arith.constant 0 : i32
    %c0_i32_1 = arith.constant 0 : i32
    return %arg0, %c0_i32, %arg1, %c0_i32_0 : i32, i32, i32, i32
  }
  func.func @transform_2(%arg0: i32, %arg1: i32) -> (i32, i32, i32) {
    %c0_i32 = arith.constant 0 : i32
    %c0_i32_0 = arith.constant 0 : i32
    %c0_i32_1 = arith.constant 0 : i32
    return %arg0, %c0_i32, %c0_i32_0 : i32, i32, i32
  }
  func.func @transform_3(%arg0: i32, %arg1: i32) -> (i32, i32, i32) {
    %c0_i32 = arith.constant 0 : i32
    %c0_i32_0 = arith.constant 0 : i32
    %c0_i32_1 = arith.constant 0 : i32
    return %arg0, %c0_i32, %c0_i32_0 : i32, i32, i32
  }
}

</mosaic_0001>

<bundles_post_ra>
// kernel: tpu_custom_call.1
= control target key start
LH: loop header
LB: loop body
LE: loop exit
PB: predicated region body
PF: predicated region fallthrough
CT: control target
= control target key end

     0   :  { %9 = vsyncpa [#allocation3], 0  ;;  %s848_s0 = inlined_call_operand.hbm [shape: f32[2,3,2,128], index: 0, kind: input, shape index: {}]   ;;  %s849_s1 = inlined_call_operand.hbm [shape: s8[2,1,2,128], index: 1, kind: input, shape index: {}]   ;;  %s850_s2 = inlined_call_operand.vmem [shape: f32[2,3,128], index: 2, kind: output, shape index: {0}]   ;;  %s851_s3 = inlined_call_operand.vmem [shape: f32[2,3,128], index: 3, kind: output, shape index: {1}]  }
   0x1   :  { %11 = vsyncpa [#allocation3 + $0x1], 0 }
   0x2   :  { %12 = vsyncpa [#allocation5], 0 }
   0x3   :  { %14 = vsyncpa [#allocation5 + $0x1], 0  ;;  %s721_s12 = smov 0   ;;  %s723_s13 = smov 0  }
   0x4   :  { %s725_s14 = smov 0   ;;  %s727_s15 = smov 0  }
   0x5   :  { %s729_s16 = smov 0   ;;  %s731_s17 = smov 0  }
   0x6 LB: > { %s493_s18 = sadd.s32 4294967295, %s696_s17   ;;  %s32_s19 = sadd.s32 1, %s692_s16  ;;  %s696_s17 = sphi %s731_s17, %s20_s17   ;;  %s692_s16 = sphi %s729_s16, %s858_s16   ;;  %s688_s15 = sphi %s727_s15, %s857_s15   ;;  %s684_s14 = sphi %s725_s14, %s856_s14   ;;  %s680_s13 = sphi %s723_s13, %s855_s13   ;;  %s676_s12 = sphi %s721_s12, %s854_s12  }
   0x7   : > { %p34_p0 = scmp.ge.s32.totalorder %s32_s19, 2  ;;  %s41_s20 = sadd.s32 1, %s684_s14 }
   0x8   : > { %p48_p1 = scmp.ne.s32.totalorder %s684_s14, %s680_s13  ;;  %p49_p2 = scmp.eq.s32.totalorder %s696_s17, 0 }
   0x9   : > { %s860_s19 = smov (%p34_p0, %s32_s19), 0  ;;  %p54_p4 = scmp.ne.s32.totalorder %s680_s13, %s676_s12 }
   0xa   : > { %p50_p3 = por %p49_p2, %p48_p1  ;;  %s36_s21 = ssub.s32 %s692_s16, %s860_s19 }
   0xb   : > { %p55_p5 = scmp.eq.s32.totalorder %s493_s18, 0  ;;  %p39_p6 = scmp.eq.s32.totalorder %s36_s21, 0 }
   0xc   : > { %p522_p8 = scmp.lt.s32.totalorder %s696_s17, 2  ;;  %s158_s24 = sand.u32 1, %s684_s14  }
   0xd   : > { %p760_p7 = por %p55_p5, %p54_p4  ;;  %s509_s25 = smul.u32 6, %s692_s16 }
   0xe   : > { %s766_s23 = scalar_select %p39_p6, %s684_s14, %s41_s20  }
   0xf   : > { %s508_s26 = smul.u32 6, %s158_s24  ;;  %s168_s29 = scalar_lea.hbm %s848_s0, %s509_s25 }
  0x10   : > { %p773_p9 = pnand %p522_p8, %p50_p3  ;;  %s169_s4 = sshll.u32 %s168_s29, 4  ;;  %s170_s4 = int_to_ptr.hbm [resolvable:$true] %s169_s4 }
  0x11   : > { %s162_s5 = scalar_lea.vmem [#allocation2], %s508_s26  ;;  %s159_s7 = scalar_lea.sflag [#allocation3], %s158_s24 }
  0x12   : > { %s171_s6 = sshll.u32 %s162_s5, 4  ;;  %s698_s8 = smov 32   ;;  %s172_s6 = int_to_ptr.vmem [resolvable:$true] %s171_s6 }
  0x13   : > { %s699_s9 = smov 2   ;;  %p498_p10 = scmp.ge.s32.totalorder %s696_s17, 1 }
  0x14   : > { %518 = dma.hbm_to_vmem [thread:$0]  (!%p773_p9), %s170_s4, 96, %s172_s6, %s159_s7, %s698_s8, %s698_s8, %s699_s9  }
  0x15   : > { %p197_p11 = scmp.lt.s32.totalorder %s696_s17, 3  ;;  %s188_s12 = scalar_lea.hbm %s849_s1, %s692_s16 }
  0x16   : > { %s190_s18 = sshll.u32 %s188_s12, 4  ;;  %s184_s20 = scalar_lea.vmem [#allocation4], %s158_s24  ;;  %s191_s18 = int_to_ptr.hbm [resolvable:$true] %s190_s18 }
  0x17   : > { %p198_p12 = pnand %p498_p10, %p197_p11  ;;  %s192_s21 = sshll.u32 %s184_s20, 4  ;;  %s193_s21 = int_to_ptr.vmem [resolvable:$true] %s192_s21 }
  0x18   : > { %s182_s25 = scalar_lea.sflag [#allocation5], %s158_s24  ;;  %s788_s26 = sand.u32 (!%p198_p12), 1, %s680_s13  }
  0x19   : > { %521 = dma.hbm_to_vmem [thread:$0]  (!%p773_p9), %s191_s18, 16, %s193_s21, %s182_s25  }
  0x1a   : > { %201 = sbr.rel (%p198_p12) target bundleno = 98 (0x62), region = 28  ;;  %s204_s28 = scalar_lea.sflag (!%p198_p12), [#allocation3], %s788_s26 }
  0x1b   : > { %s510_s27 = smul.u32 (!%p198_p12), 6, %s788_s26 }
  0x1d   : > { %s207_s29 = scalar_lea.vmem (!%p198_p12), [#allocation2], %s510_s27 }
  0x1f   : > { %667 = dma.done.wait (%p760_p7), %s204_s28, 96  }
  0x20   : > { %669 = vsyncadd (%p760_p7), %s204_s28, 4294967200  ;;  %s214_s24 = scalar_lea.sflag [#allocation5], %s788_s26  ;;  %s216_s30 = scalar_lea.vmem [#allocation4], %s788_s26 }
  0x21   : > { %671 = dma.done.wait (%p760_p7), %s214_s24, 16  }
  0x22   : > { %673 = vsyncadd (%p760_p7), %s214_s24, 4294967280  ;;  %p247_p13 = scmp.lt.s32.totalorder %s688_s15, 1  ;;  %v700_v0 = vmov 0.0   ;;  %v261_v1 = vld [vmem:[%s207_s29] sm:$0x3]  ;;  %vm300_vm7 = vcmask 1041408  }
  0x23   : > { %v501_v2 = vld [vmem:[%s207_s29 + $0x2] sm:$0x3]  ;;  %v502_v3 = vld [vmem:[%s207_s29 + $0x4] sm:$0x3]  ;;  %v293_v17 = vld [vmem:[%s216_s30] sm:$0x1] }
  0x24   : > { %s862_s15 = smov (!%p247_p13, %s688_s15), 1  ;;  %v266_v4 = vmax.f32 %v261_v1, %v501_v2  ;;  %v294_v21 = vunpack.c.0.s8 %v293_v17  ;;  %vm357_vm8 = vcmask 1040384  }
  0x25   : > { %s499_s4 = sshll.u32 %s862_s15, 2 }
  0x26   : > { %s807_s7 = scalar_lea.vmem %s850_s2, %s499_s4  ;;  %s812_s10 = scalar_lea.vmem %s851_s3, %s499_s4  ;;  %v267_v5 = vmax.f32 %v266_v4, %v502_v3  ;;  %vm296_vm4 = vcmp.eq.s32.totalorder %v294_v21, 0  ;;  %vm317_vm5 = vcmp.eq.s32.totalorder %v294_v21, 1  ;;  %vm337_vm6 = vcmp.eq.s32.totalorder %v294_v21, 2 }
  0x27   : > { %259 = vst [vmem:[%s807_s7] sm:$0x7] %v700_v0  ;;  %v503_v29 = vsel %vm296_vm4, 1.0, %v700_v0  ;;  %v504_v30 = vsel %vm317_vm5, 1.0, %v700_v0  ;;  %v505_v34 = vsel %vm337_vm6, 1.0, %v700_v0 }
  0x28   : > { %260 = vst [vmem:[%s812_s10] sm:$0x7] %v700_v0  ;;  %v268_v6 = vsub.f32 %v261_v1, %v267_v5  ;;  %v271_v7 = vsub.f32 %v501_v2, %v267_v5  ;;  %v274_v8 = vsub.f32 %v502_v3, %v267_v5 }
  0x2a   : > { %v269_v9 = vmul.f32 1.442695, %v268_v6  ;;  %v272_v10 = vmul.f32 1.442695, %v271_v7  ;;  %v275_v11 = vmul.f32 1.442695, %v274_v8 }
  0x2c   : > { %574 = vpow2.f32 %v269_v9 }
  0x2d   : > { %576 = vpow2.f32 %v272_v10 }
  0x2e   : > { %578 = vpow2.f32 %v275_v11 }
  0x32   : > { %v575_v12 = vpop.eup %574 }
  0x33   : > { %v577_v13 = vpop.eup %576 }
  0x34   : > { %v579_v14 = vpop.eup %578  ;;  %v277_v15 = vadd.f32 %v577_v13, %v575_v12 }
  0x36   : > { %v278_v16 = vadd.f32 %v579_v14, %v277_v15 }
  0x38   : > { %580 = vrcp.f32 %v278_v16  ;;  %v290_v20 = vand.u32 2147483648, %v278_v16  ;;  %vm284_vm0 = vweird.f32 %v278_v16  ;;  %v288_v23 = vand.u32 2147483647, %v278_v16 }
  0x3a   : > { %v291_v25 = vor.u32 1.1754944e-38, %v290_v20  ;;  %vm289_vm3 = vcmp.eq.f32.partialorder %v288_v23, 8.507059e+37  ;;  %v356_v20 = vld [vmem:[%s807_s7] sm:$0x7] }
  0x3e   : > { %v581_v18 = vpop.eup %580 }
  0x3f   : > { %v280_v19 = vmul.f32 %v581_v18, %v278_v16  ;;  %vm285_vm1 = vweird.f32 %v581_v18 }
  0x40   : > { %vm286_vm2 = vmor %vm284_vm0, %vm285_vm1 }
  0x41   : > { %v281_v22 = vsub.f32 1.0, %v280_v19 }
  0x43   : > { %v282_v24 = vmul.f32 %v581_v18, %v281_v22  ;;  %v362_v22 = vld [vmem:[%s812_s10] sm:$0x7] }
  0x45   : > { %v283_v26 = vadd.f32 %v581_v18, %v282_v24 }
  0x47   : > { %v287_v27 = vsel %vm286_vm2, %v581_v18, %v283_v26 }
  0x48   : > { %v292_v28 = vsel %vm289_vm3, %v291_v25, %v287_v27 }
  0x49   : > { %v295_v31 = vmul.f32 %v575_v12, %v292_v28  ;;  %v316_v32 = vmul.f32 %v577_v13, %v292_v28  ;;  %v336_v33 = vmul.f32 %v579_v14, %v292_v28 }
  0x4b   : > { %v299_v35 = vmul.f32 %v503_v29, %v295_v31  ;;  %v308_v36 = vadd.f32 %v503_v29, %v295_v31  ;;  %v320_v37 = vmul.f32 %v504_v30, %v316_v32  ;;  %v328_v38 = vadd.f32 %v504_v30, %v316_v32 }
  0x4c   : > { %v340_v39 = vmul.f32 %v505_v34, %v336_v33  ;;  %v348_v40 = vadd.f32 %v505_v34, %v336_v33 }
  0x4d   : > { %v301_v41 = vsel %vm300_vm7, %v299_v35, 0.0  ;;  %v309_v42 = vsel %vm300_vm7, %v308_v36, 0.0  ;;  %v321_v43 = vsel %vm300_vm7, %v320_v37, 0.0  ;;  %v329_v44 = vsel %vm300_vm7, %v328_v38, 0.0 }
  0x4e   : > { %v302_v45 = vrot.slane %v301_v41, 4  ;;  %v310_v46 = vrot.slane %v309_v42, 4  ;;  %v322_v47 = vrot.slane %v321_v43, 4  ;;  %v330_v48 = vrot.slane %v329_v44, 4 }
  0x4f   : > { %v341_v49 = vsel %vm300_vm7, %v340_v39, 0.0  ;;  %v349_v50 = vsel %vm300_vm7, %v348_v40, 0.0 }
  0x50   : > { %v303_v51 = vadd.f32 %v302_v45, %v301_v41  ;;  %v311_v52 = vadd.f32 %v310_v46, %v309_v42  ;;  %v323_v53 = vadd.f32 %v322_v47, %v321_v43  ;;  %v331_v54 = vadd.f32 %v330_v48, %v329_v44 }
  0x51   : > { %v342_v55 = vrot.slane %v341_v49, 4  ;;  %v350_v56 = vrot.slane %v349_v50, 4 }
  0x52   : > { %v304_v57 = vrot.slane %v303_v51, 2  ;;  %v324_v58 = vrot.slane %v323_v53, 2  ;;  %v312_v59 = vrot.slane %v311_v52, 2  ;;  %v332_v60 = vrot.slane %v331_v54, 2 }
  0x53   : > { %v343_v61 = vadd.f32 %v342_v55, %v341_v49  ;;  %v351_v62 = vadd.f32 %v350_v56, %v349_v50 }
  0x54   : > { %v305_v63 = vadd.f32 %v304_v57, %v303_v51  ;;  %v325_v0 = vadd.f32 %v324_v58, %v323_v53  ;;  %v313_v1 = vadd.f32 %v312_v59, %v311_v52  ;;  %v333_v2 = vadd.f32 %v332_v60, %v331_v54 }
  0x55   : > { %v344_v3 = vrot.slane %v343_v61, 2  ;;  %v352_v4 = vrot.slane %v351_v62, 2 }
  0x56   : > { %v306_v5 = vrot.slane %v305_v63, 1  ;;  %v326_v6 = vrot.slane %v325_v0, 1  ;;  %v314_v7 = vrot.slane %v313_v1, 1  ;;  %v334_v8 = vrot.slane %v333_v2, 1 }
  0x57   : > { %v345_v9 = vadd.f32 %v344_v3, %v343_v61  ;;  %v353_v10 = vadd.f32 %v352_v4, %v351_v62 }
  0x58   : > { %v307_v11 = vadd.f32 %v306_v5, %v305_v63  ;;  %v327_v12 = vadd.f32 %v326_v6, %v325_v0  ;;  %v315_v13 = vadd.f32 %v314_v7, %v313_v1  ;;  %v335_v14 = vadd.f32 %v334_v8, %v333_v2 }
  0x59   : > { %v346_v15 = vrot.slane %v345_v9, 1  ;;  %v354_v16 = vrot.slane %v353_v10, 1 }
  0x5a   : > { %v358_v17 = vsel %vm357_vm8, %v307_v11, %v327_v12  ;;  %v363_v18 = vsel %vm357_vm8, %v315_v13, %v335_v14 }
  0x5b   : > { %v347_v19 = vadd.f32 %v346_v15, %v345_v9  ;;  %v355_v21 = vadd.f32 %v354_v16, %v353_v10 }
  0x5d   : > { %v359_v23 = vsel %vm300_vm7, %v358_v17, %v347_v19  ;;  %v364_v24 = vsel %vm300_vm7, %v363_v18, %v355_v21 }
  0x5e   : > { %v360_v25 = vadd.f32 %v359_v23, %v356_v20  ;;  %v365_v26 = vadd.f32 %v364_v24, %v362_v22 }
  0x60   : > { %361 = vst [vmem:[%s807_s7] sm:$0x7] %v360_v25 }
  0x61   : > { %366 = vst [vmem:[%s812_s10] sm:$0x7] %v365_v26 }
  0x62 PF: > { %s20_s17 = sadd.s32 1, %s696_s17   ;;  %s854_s12 = smov %s680_s13 }
  0x63   : > { %p17_p0 = scmp.ge.s32.totalorder %s20_s17, 4   ;;  %s855_s13 = smov %s684_s14 }
  0x64   : > { %s856_s14 = smov %s766_s23  ;;  %s857_s15 = smov %s692_s16 }
  0x65   : > { %s858_s16 = smov %s860_s19  ;;  %19 = sbr.rel (!%p17_p0) target bundleno = 6 (0x6), region = 99 }
  0x6a   :  { %400 = vsyncpa [#allocation3], 1 }
  0x6b   :  { %402 = vsyncpa [#allocation3 + $0x1], 1 }
  0x6c   :  { %403 = vsyncpa [#allocation5], 1 }
  0x6d   :  { %405 = vsyncpa [#allocation5 + $0x1], 1 }

</bundles_post_ra>
